<compile_context>
chip_gen: v6e
topology: v6e:2x2x1
jax: 0.10.0
libtpu: 0.0.40
codegen_flags: <defaults>
</compile_context>

<pallas_src>
import jax
import jax.numpy as jnp
from jax.experimental import pallas as pl
from jax.experimental.pallas import tpu as pltpu

DIMS = [28 * 28, 140, 130, 120, 110, 10]  # fc1..fc5
OUT_PAD = 128                              # lane-dense padded output width


def _round_up(x, m):
    return ((x + m - 1) // m) * m


def mlp_kernel(x_ref,
               w1_ref, b1_ref,
               w2_ref, b2_ref,
               w3_ref, b3_ref,
               w4_ref, b4_ref,
               w5_ref, b5_ref,
               o_ref):
    # x arrives as f32 straight from HBM; cast to bf16 here (in-kernel) so the
    # wrapper never does an extra full pass over x. Dots run bf16 on the MXU
    # with f32 accumulation; bias + ReLU in f32 (v5e has no bf16 VPU).
    h = x_ref[...].astype(jnp.bfloat16)
    for w_ref, b_ref in ((w1_ref, b1_ref), (w2_ref, b2_ref),
                         (w3_ref, b3_ref), (w4_ref, b4_ref)):
        acc = jnp.dot(h, w_ref[...], preferred_element_type=jnp.float32)
        acc = jnp.maximum(acc + b_ref[...], 0.0)   # f32 elementwise
        h = acc.astype(jnp.bfloat16)               # bf16 only for the next dot
    # fc5 (no ReLU), padded to 128 output lanes for unmasked stores.
    out = jnp.dot(h, w5_ref[...], preferred_element_type=jnp.float32) + b5_ref[...]
    o_ref[...] = out.astype(o_ref.dtype)           # bf16 writeback


def mlp_forward(x_nchw, params, tile_b=2048, vmem_limit_bytes=None):
    """x_nchw: (B, 1, 28, 28) float32. params: list of (W_t (in,out), b (1,out)).

    Returns (B, 10) float32 logits.
    """
    B = x_nchw.shape[0]
    d_in = DIMS[0]
    x = x_nchw.reshape(B, -1)   # nn.Flatten; stays f32, bf16 cast is in-kernel

    # Tile policy: large tiles amortize per-step overhead; cap so there are at
    # least 2 grid steps (both v7x TensorCores get work) and keep a multiple of
    # 8 sublanes. No padding of x: Pallas masks the ragged last block.
    tile_b = max(8, min(tile_b, _round_up(pl.cdiv(B, 2), 8)))
    grid = (pl.cdiv(B, tile_b),)

    in_specs = [pl.BlockSpec((tile_b, d_in), lambda i: (i, 0))]
    flat_params = []
    for li, (w_t, b) in enumerate(params):
        w = w_t.astype(jnp.bfloat16)
        bb = b.astype(jnp.float32)
        if li == 4:  # zero-pad fc5 to 128 output columns (lane-dense stores)
            w = jnp.pad(w, ((0, 0), (0, OUT_PAD - w.shape[1])))
            bb = jnp.pad(bb, ((0, 0), (0, OUT_PAD - bb.shape[1])))
        flat_params += [w, bb]
        # Constant index_map -> weights/biases stay resident in VMEM across grid.
        in_specs.append(pl.BlockSpec(w.shape, lambda i: (0, 0)))
        in_specs.append(pl.BlockSpec(bb.shape, lambda i: (0, 0)))

    out = pl.pallas_call(
        mlp_kernel,
        out_shape=jax.ShapeDtypeStruct((B, OUT_PAD), jnp.bfloat16),
        grid=grid,
        in_specs=in_specs,
        out_specs=pl.BlockSpec((tile_b, OUT_PAD), lambda i: (i, 0)),
        compiler_params=pltpu.CompilerParams(
            dimension_semantics=("parallel",),
            vmem_limit_bytes=vmem_limit_bytes),
    )(x, *flat_params)
    # Slice off the lane padding; tiny (B, 10) cast back to f32.
    return out[:, :DIMS[-1]].astype(jnp.float32)


def init_params(key):
    """Deterministic PyTorch-style init: U(-1/sqrt(fan_in), 1/sqrt(fan_in))."""
    params = []
    for i in range(5):
        fan_in, fan_out = DIMS[i], DIMS[i + 1]
        key, kw, kb = jax.random.split(key, 3)
        bound = 1.0 / (fan_in ** 0.5)
        # stored pre-transposed: (in, out) so the kernel computes x @ W + b
        w_t = jax.random.uniform(kw, (fan_in, fan_out), jnp.float32, -bound, bound)
        b = jax.random.uniform(kb, (1, fan_out), jnp.float32, -bound, bound)
        params.append((w_t, b))
    return params


def mlp_reference(x_nchw, params):
    """Pure-JAX reference using the same precision recipe (bf16 dots, f32 acc,
    bf16 final writeback)."""
    x = x_nchw.reshape(x_nchw.shape[0], -1).astype(jnp.bfloat16)
    for i, (w_t, b) in enumerate(params):
        h = jnp.dot(x, w_t.astype(jnp.bfloat16),
                    preferred_element_type=jnp.float32) + b
        if i < 4:
            x = jnp.maximum(h, 0.0).astype(jnp.bfloat16)
        else:
            x = h
    return x.astype(jnp.bfloat16).astype(jnp.float32)


if __name__ == "__main__":
    key = jax.random.PRNGKey(0)
    key, kx = jax.random.split(key)
    params = init_params(key)

    # Primary small test: batch=2 (single partial tile -> exercises the ragged
    # masking path that replaced the full-array pad).
    x = jax.random.normal(kx, (2, 1, 28, 28), jnp.float32)
    out = jax.block_until_ready(mlp_forward(x, params))
    ref = mlp_reference(x, params)
    assert out.shape == (2, 10), out.shape
    assert jnp.allclose(out, ref, atol=2e-2, rtol=2e-2), "mismatch vs reference (B=2)"

    # Secondary test: multi-tile grid with a ragged last tile (B % tile_b != 0),
    # verifying masked OOB stores / no cross-row contamination.
    key, kx2 = jax.random.split(key)
    x2 = jax.random.normal(kx2, (19, 1, 28, 28), jnp.float32)
    out2 = jax.block_until_ready(mlp_forward(x2, params, tile_b=8))
    ref2 = mlp_reference(x2, params)
    assert out2.shape == (19, 10), out2.shape
    assert jnp.allclose(out2, ref2, atol=2e-2, rtol=2e-2), "mismatch vs reference (B=19)"

    print("KERNEL_OK")
</pallas_src>

<mosaic_0001>
module attributes {stable_mosaic.version = 11 : i64} {
  func.func @mlp_kernel(%arg0: i32, %arg1: memref<8x784xf32, #tpu.memory_space<vmem>>, %arg2: memref<784x140xbf16, #tpu.memory_space<vmem>>, %arg3: memref<1x140xf32, #tpu.memory_space<vmem>>, %arg4: memref<140x130xbf16, #tpu.memory_space<vmem>>, %arg5: memref<1x130xf32, #tpu.memory_space<vmem>>, %arg6: memref<130x120xbf16, #tpu.memory_space<vmem>>, %arg7: memref<1x120xf32, #tpu.memory_space<vmem>>, %arg8: memref<120x110xbf16, #tpu.memory_space<vmem>>, %arg9: memref<1x110xf32, #tpu.memory_space<vmem>>, %arg10: memref<110x128xbf16, #tpu.memory_space<vmem>>, %arg11: memref<1x128xf32, #tpu.memory_space<vmem>>, %arg12: memref<8x128xbf16, #tpu.memory_space<vmem>>) attributes {dimension_semantics = [#tpu.dimension_semantics<parallel>], iteration_bounds = array<i64: 1>, scalar_prefetch = 0 : i64, scratch_operands = 0 : i64, tpu.core_type = #tpu.core_type<tc>, window_params = [{transform_indices = @transform_0, window_bounds = array<i64: 8, 784>}, {pipeline_mode = #tpu.pipeline_mode<synchronous>, transform_indices = @transform_1, window_bounds = array<i64: 784, 140>}, {pipeline_mode = #tpu.pipeline_mode<synchronous>, transform_indices = @transform_2, window_bounds = array<i64: 1, 140>}, {pipeline_mode = #tpu.pipeline_mode<synchronous>, transform_indices = @transform_3, window_bounds = array<i64: 140, 130>}, {pipeline_mode = #tpu.pipeline_mode<synchronous>, transform_indices = @transform_4, window_bounds = array<i64: 1, 130>}, {pipeline_mode = #tpu.pipeline_mode<synchronous>, transform_indices = @transform_5, window_bounds = array<i64: 130, 120>}, {pipeline_mode = #tpu.pipeline_mode<synchronous>, transform_indices = @transform_6, window_bounds = array<i64: 1, 120>}, {pipeline_mode = #tpu.pipeline_mode<synchronous>, transform_indices = @transform_7, window_bounds = array<i64: 120, 110>}, {pipeline_mode = #tpu.pipeline_mode<synchronous>, transform_indices = @transform_8, window_bounds = array<i64: 1, 110>}, {pipeline_mode = #tpu.pipeline_mode<synchronous>, transform_indices = @transform_9, window_bounds = array<i64: 110, 128>}, {pipeline_mode = #tpu.pipeline_mode<synchronous>, transform_indices = @transform_10, window_bounds = array<i64: 1, 128>}, {transform_indices = @transform_11, window_bounds = array<i64: 8, 128>}]} {
    %c0 = arith.constant 0 : index
    %c0_0 = arith.constant 0 : index
    %0 = vector.load %arg1[%c0, %c0_0] : memref<8x784xf32, #tpu.memory_space<vmem>>, vector<8x784xf32>
    %1 = arith.truncf %0 : vector<8x784xf32> to vector<8x784xbf16>
    %c0_1 = arith.constant 0 : index
    %c0_2 = arith.constant 0 : index
    %2 = vector.load %arg2[%c0_1, %c0_2] : memref<784x140xbf16, #tpu.memory_space<vmem>>, vector<784x140xbf16>
    %cst = arith.constant dense<0.000000e+00> : vector<8x140xf32>
    %3 = tpu.matmul %1, %2, %cst {dimension_numbers = #tpu.dot_dimension_numbers<[1], [0], [0], [1], [0, 0, 1, 1], [], []>} : vector<8x784xbf16>, vector<784x140xbf16>, vector<8x140xf32> -> vector<8x140xf32>
    %c0_3 = arith.constant 0 : index
    %c0_4 = arith.constant 0 : index
    %4 = vector.load %arg3[%c0_3, %c0_4] : memref<1x140xf32, #tpu.memory_space<vmem>>, vector<1x140xf32>
    %5 = vector.broadcast %4 : vector<1x140xf32> to vector<8x140xf32>
    %6 = arith.addf %3, %5 : vector<8x140xf32>
    %cst_5 = arith.constant 0.000000e+00 : f32
    %7 = vector.broadcast %cst_5 : f32 to vector<8x140xf32>
    %8 = arith.maximumf %6, %7 : vector<8x140xf32>
    %9 = arith.truncf %8 : vector<8x140xf32> to vector<8x140xbf16>
    %c0_6 = arith.constant 0 : index
    %c0_7 = arith.constant 0 : index
    %10 = vector.load %arg4[%c0_6, %c0_7] : memref<140x130xbf16, #tpu.memory_space<vmem>>, vector<140x130xbf16>
    %cst_8 = arith.constant dense<0.000000e+00> : vector<8x130xf32>
    %11 = tpu.matmul %9, %10, %cst_8 {dimension_numbers = #tpu.dot_dimension_numbers<[1], [0], [0], [1], [0, 0, 1, 1], [], []>} : vector<8x140xbf16>, vector<140x130xbf16>, vector<8x130xf32> -> vector<8x130xf32>
    %c0_9 = arith.constant 0 : index
    %c0_10 = arith.constant 0 : index
    %12 = vector.load %arg5[%c0_9, %c0_10] : memref<1x130xf32, #tpu.memory_space<vmem>>, vector<1x130xf32>
    %13 = vector.broadcast %12 : vector<1x130xf32> to vector<8x130xf32>
    %14 = arith.addf %11, %13 : vector<8x130xf32>
    %cst_11 = arith.constant 0.000000e+00 : f32
    %15 = vector.broadcast %cst_11 : f32 to vector<8x130xf32>
    %16 = arith.maximumf %14, %15 : vector<8x130xf32>
    %17 = arith.truncf %16 : vector<8x130xf32> to vector<8x130xbf16>
    %c0_12 = arith.constant 0 : index
    %c0_13 = arith.constant 0 : index
    %18 = vector.load %arg6[%c0_12, %c0_13] : memref<130x120xbf16, #tpu.memory_space<vmem>>, vector<130x120xbf16>
    %cst_14 = arith.constant dense<0.000000e+00> : vector<8x120xf32>
    %19 = tpu.matmul %17, %18, %cst_14 {dimension_numbers = #tpu.dot_dimension_numbers<[1], [0], [0], [1], [0, 0, 1, 1], [], []>} : vector<8x130xbf16>, vector<130x120xbf16>, vector<8x120xf32> -> vector<8x120xf32>
    %c0_15 = arith.constant 0 : index
    %c0_16 = arith.constant 0 : index
    %20 = vector.load %arg7[%c0_15, %c0_16] : memref<1x120xf32, #tpu.memory_space<vmem>>, vector<1x120xf32>
    %21 = vector.broadcast %20 : vector<1x120xf32> to vector<8x120xf32>
    %22 = arith.addf %19, %21 : vector<8x120xf32>
    %cst_17 = arith.constant 0.000000e+00 : f32
    %23 = vector.broadcast %cst_17 : f32 to vector<8x120xf32>
    %24 = arith.maximumf %22, %23 : vector<8x120xf32>
    %25 = arith.truncf %24 : vector<8x120xf32> to vector<8x120xbf16>
    %c0_18 = arith.constant 0 : index
    %c0_19 = arith.constant 0 : index
    %26 = vector.load %arg8[%c0_18, %c0_19] : memref<120x110xbf16, #tpu.memory_space<vmem>>, vector<120x110xbf16>
    %cst_20 = arith.constant dense<0.000000e+00> : vector<8x110xf32>
    %27 = tpu.matmul %25, %26, %cst_20 {dimension_numbers = #tpu.dot_dimension_numbers<[1], [0], [0], [1], [0, 0, 1, 1], [], []>} : vector<8x120xbf16>, vector<120x110xbf16>, vector<8x110xf32> -> vector<8x110xf32>
    %c0_21 = arith.constant 0 : index
    %c0_22 = arith.constant 0 : index
    %28 = vector.load %arg9[%c0_21, %c0_22] : memref<1x110xf32, #tpu.memory_space<vmem>>, vector<1x110xf32>
    %29 = vector.broadcast %28 : vector<1x110xf32> to vector<8x110xf32>
    %30 = arith.addf %27, %29 : vector<8x110xf32>
    %cst_23 = arith.constant 0.000000e+00 : f32
    %31 = vector.broadcast %cst_23 : f32 to vector<8x110xf32>
    %32 = arith.maximumf %30, %31 : vector<8x110xf32>
    %33 = arith.truncf %32 : vector<8x110xf32> to vector<8x110xbf16>
    %c0_24 = arith.constant 0 : index
    %c0_25 = arith.constant 0 : index
    %34 = vector.load %arg10[%c0_24, %c0_25] : memref<110x128xbf16, #tpu.memory_space<vmem>>, vector<110x128xbf16>
    %cst_26 = arith.constant dense<0.000000e+00> : vector<8x128xf32>
    %35 = tpu.matmul %33, %34, %cst_26 {dimension_numbers = #tpu.dot_dimension_numbers<[1], [0], [0], [1], [0, 0, 1, 1], [], []>} : vector<8x110xbf16>, vector<110x128xbf16>, vector<8x128xf32> -> vector<8x128xf32>
    %c0_27 = arith.constant 0 : index
    %c0_28 = arith.constant 0 : index
    %36 = vector.load %arg11[%c0_27, %c0_28] : memref<1x128xf32, #tpu.memory_space<vmem>>, vector<1x128xf32>
    %37 = vector.broadcast %36 : vector<1x128xf32> to vector<8x128xf32>
    %38 = arith.addf %35, %37 : vector<8x128xf32>
    %39 = arith.truncf %38 : vector<8x128xf32> to vector<8x128xbf16>
    %c0_29 = arith.constant 0 : index
    %c0_30 = arith.constant 0 : index
    %40 = vector.load %arg12[%c0_29, %c0_30] : memref<8x128xbf16, #tpu.memory_space<vmem>>, vector<8x128xbf16>
    tpu.vector_store %arg12[%c0_29, %c0_30], %39 {strides = array<i32>} : memref<8x128xbf16, #tpu.memory_space<vmem>>, vector<8x128xbf16>,
    return
  }
  func.func @transform_0(%arg0: i32) -> (i32, i32) {
    %c0_i32 = arith.constant 0 : i32
    %c0_i32_0 = arith.constant 0 : i32
    return %arg0, %c0_i32 : i32, i32
  }
  func.func @transform_1(%arg0: i32) -> (i32, i32) {
    %c0_i32 = arith.constant 0 : i32
    %c0_i32_0 = arith.constant 0 : i32
    %c0_i32_1 = arith.constant 0 : i32
    return %c0_i32, %c0_i32_0 : i32, i32
  }
  func.func @transform_2(%arg0: i32) -> (i32, i32) {
    %c0_i32 = arith.constant 0 : i32
    %c0_i32_0 = arith.constant 0 : i32
    %c0_i32_1 = arith.constant 0 : i32
    return %c0_i32, %c0_i32_0 : i32, i32
  }
  func.func @transform_3(%arg0: i32) -> (i32, i32) {
    %c0_i32 = arith.constant 0 : i32
    %c0_i32_0 = arith.constant 0 : i32
    %c0_i32_1 = arith.constant 0 : i32
    return %c0_i32, %c0_i32_0 : i32, i32
  }
  func.func @transform_4(%arg0: i32) -> (i32, i32) {
    %c0_i32 = arith.constant 0 : i32
    %c0_i32_0 = arith.constant 0 : i32
    %c0_i32_1 = arith.constant 0 : i32
    return %c0_i32, %c0_i32_0 : i32, i32
  }
  func.func @transform_5(%arg0: i32) -> (i32, i32) {
    %c0_i32 = arith.constant 0 : i32
    %c0_i32_0 = arith.constant 0 : i32
    %c0_i32_1 = arith.constant 0 : i32
    return %c0_i32, %c0_i32_0 : i32, i32
  }
  func.func @transform_6(%arg0: i32) -> (i32, i32) {
    %c0_i32 = arith.constant 0 : i32
    %c0_i32_0 = arith.constant 0 : i32
    %c0_i32_1 = arith.constant 0 : i32
    return %c0_i32, %c0_i32_0 : i32, i32
  }
  func.func @transform_7(%arg0: i32) -> (i32, i32) {
    %c0_i32 = arith.constant 0 : i32
    %c0_i32_0 = arith.constant 0 : i32
    %c0_i32_1 = arith.constant 0 : i32
    return %c0_i32, %c0_i32_0 : i32, i32
  }
  func.func @transform_8(%arg0: i32) -> (i32, i32) {
    %c0_i32 = arith.constant 0 : i32
    %c0_i32_0 = arith.constant 0 : i32
    %c0_i32_1 = arith.constant 0 : i32
    return %c0_i32, %c0_i32_0 : i32, i32
  }
  func.func @transform_9(%arg0: i32) -> (i32, i32) {
    %c0_i32 = arith.constant 0 : i32
    %c0_i32_0 = arith.constant 0 : i32
    %c0_i32_1 = arith.constant 0 : i32
    return %c0_i32, %c0_i32_0 : i32, i32
  }
  func.func @transform_10(%arg0: i32) -> (i32, i32) {
    %c0_i32 = arith.constant 0 : i32
    %c0_i32_0 = arith.constant 0 : i32
    %c0_i32_1 = arith.constant 0 : i32
    return %c0_i32, %c0_i32_0 : i32, i32
  }
  func.func @transform_11(%arg0: i32) -> (i32, i32) {
    %c0_i32 = arith.constant 0 : i32
    %c0_i32_0 = arith.constant 0 : i32
    return %arg0, %c0_i32 : i32, i32
  }
}

</mosaic_0001>

<bundles_post_ra>
// kernel: tpu_custom_call.1
= control target key start
LH: loop header
LB: loop body
LE: loop exit
PB: predicated region body
PF: predicated region fallthrough
CT: control target
= control target key end

     0   :  { %16 = vsyncpa [#allocation3], 0  ;;  %v1935_v38 = vmov 1983009808   ;;  %v63_v40 = vlaneseq  ;;  %vm741_vm0 = vcmask 130048   ;;  %vm1035_vm1 = vcmask 1045504   ;;  %s2516_s0 = inlined_call_operand.vmem [shape: f32[2,784], index: 0, kind: input, shape index: {}]   ;;  %s2517_s1 = inlined_call_operand.vmem [shape: bf16[784,140], index: 1, kind: input, shape index: {}]   ;;  %s2518_s2 = inlined_call_operand.vmem [shape: f32[1,140], index: 2, kind: input, shape index: {}]   ;;  %s2519_s3 = inlined_call_operand.vmem [shape: bf16[140,130], index: 3, kind: input, shape index: {}]   ;;  %s2520_s4 = inlined_call_operand.vmem [shape: f32[1,130], index: 4, kind: input, shape index: {}]   ;;  %s2521_s5 = inlined_call_operand.vmem [shape: bf16[130,120], index: 5, kind: input, shape index: {}]   ;;  %s2522_s6 = inlined_call_operand.vmem [shape: f32[1,120], index: 6, kind: input, shape index: {}]   ;;  %s2523_s7 = inlined_call_operand.vmem [shape: bf16[120,110], index: 7, kind: input, shape index: {}]   ;;  %s2524_s8 = inlined_call_operand.vmem [shape: f32[1,110], index: 8, kind: input, shape index: {}]   ;;  %s2525_s9 = inlined_call_operand.vmem [shape: bf16[110,128], index: 9, kind: input, shape index: {}]   ;;  %s2526_s10 = inlined_call_operand.vmem [shape: f32[1,128], index: 10, kind: input, shape index: {}]   ;;  %s2527_s11 = inlined_call_operand.hbm [shape: bf16[2,128], index: 11, kind: output, shape index: {}]  }
   0x1   :  { %v1703_v0 = vld [vmem:[%s2517_s1 + $0x74] ss:$8 sps:$4 sm:$0xff]   ;;  %v1705_v1 = vld [vmem:[%s2517_s1 + $0x70] ss:$8 sps:$4 sm:$0xff]   ;;  %v1709_v4 = vld [vmem:[%s2517_s1 + $0x64] ss:$8 sps:$4 sm:$0xff]   ;;  %v61_v39 = vunpack.c.l.s4 %v1935_v38 }
   0x2   :  { %v1706_v2 = vld [vmem:[%s2517_s1 + $0x174] ss:$8 sps:$4 sm:$0xff]   ;;  %v1708_v3 = vld [vmem:[%s2517_s1 + $0x170] ss:$8 sps:$4 sm:$0xff]   ;;  %745 = vmatprep.subr.bf16.mxu0 %v1703_v0  ;;  %v1711_v5 = vld [vmem:[%s2517_s1 + $0x60] ss:$8 sps:$4 sm:$0xff]  }
   0x3   :  { %746 = vmatpush1.bf16.msra.mxu0 %v1705_v1  ;;  %786 = vmatprep.subr.bf16.mxu1 %v1706_v2  ;;  %v1712_v6 = vld [vmem:[%s2517_s1 + $0x164] ss:$8 sps:$4 sm:$0xff]   ;;  %v1714_v7 = vld [vmem:[%s2517_s1 + $0x160] ss:$8 sps:$4 sm:$0xff]   ;;  %v1715_v8 = vld [vmem:[%s2517_s1 + $0x54] ss:$8 sps:$4 sm:$0xff]   ;;  %v62_v45 = vunpack.c.0.s8 %v61_v39 }
   0x4   :  { %787 = vmatpush1.bf16.msra.mxu1 %v1708_v3  ;;  %747 = vmatprep.subr.bf16.mxu0 %v1709_v4  ;;  %v1718_v9 = vld [vmem:[%s2517_s1 + $0x154] ss:$8 sps:$4 sm:$0xff]   ;;  %v1717_v10 = vld [vmem:[%s2517_s1 + $0x50] ss:$8 sps:$4 sm:$0xff]   ;;  %v1721_v12 = vld [vmem:[%s2517_s1 + $0x44] ss:$8 sps:$4 sm:$0xff]  }
   0x5   :  { %788 = vmatprep.subr.bf16.mxu1 %v1712_v6  ;;  %v1720_v11 = vld [vmem:[%s2517_s1 + $0x150] ss:$8 sps:$4 sm:$0xff]   ;;  %v1724_v13 = vld [vmem:[%s2517_s1 + $0x144] ss:$8 sps:$4 sm:$0xff]   ;;  %v1723_v14 = vld [vmem:[%s2517_s1 + $0x40] ss:$8 sps:$4 sm:$0xff]  }
   0x6   :  { %v1726_v15 = vld [vmem:[%s2517_s1 + $0x140] ss:$8 sps:$4 sm:$0xff]   ;;  %v1727_v16 = vld [vmem:[%s2517_s1 + $0x34] ss:$8 sps:$4 sm:$0xff]   ;;  %v1729_v18 = vld [vmem:[%s2517_s1 + $0x30] ss:$8 sps:$4 sm:$0xff]  }
   0x7   :  { %748 = vmatpush1.bf16.msra.mxu0 %v1711_v5  ;;  %v1730_v17 = vld [vmem:[%s2517_s1 + $0x134] ss:$8 sps:$4 sm:$0xff]   ;;  %v1732_v19 = vld [vmem:[%s2517_s1 + $0x130] ss:$8 sps:$4 sm:$0xff]   ;;  %v1733_v20 = vld [vmem:[%s2517_s1 + $0x24] ss:$8 sps:$4 sm:$0xff]  }
   0x8   :  { %789 = vmatpush1.bf16.msra.mxu1 %v1714_v7  ;;  %749 = vmatprep.subr.bf16.mxu0 %v1715_v8  ;;  %v1736_v21 = vld [vmem:[%s2517_s1 + $0x124] ss:$8 sps:$4 sm:$0xff]   ;;  %v1735_v22 = vld [vmem:[%s2517_s1 + $0x20] ss:$8 sps:$4 sm:$0xff]   ;;  %v1739_v24 = vld [vmem:[%s2517_s1 + $0x14] ss:$8 sps:$4 sm:$0xff]  }
   0x9   :  { %790 = vmatprep.subr.bf16.mxu1 %v1718_v9  ;;  %v1738_v23 = vld [vmem:[%s2517_s1 + $0x120] ss:$8 sps:$4 sm:$0xff]   ;;  %v1742_v25 = vld [vmem:[%s2517_s1 + $0x114] ss:$8 sps:$4 sm:$0xff]   ;;  %v1741_v26 = vld [vmem:[%s2517_s1 + $0x10] ss:$8 sps:$4 sm:$0xff]  }
   0xa   :  { %v1744_v27 = vld [vmem:[%s2517_s1 + $0x110] ss:$8 sps:$4 sm:$0xff]   ;;  %v1745_v28 = vld [vmem:[%s2517_s1 + $0x4] ss:$8 sps:$4 sm:$0xff]   ;;  %v1747_v30 = vld [vmem:[%s2517_s1] ss:$8 sps:$4 sm:$0xff]  }
   0xb   :  { %750 = vmatpush1.bf16.msra.mxu0 %v1717_v10  ;;  %v1748_v29 = vld [vmem:[%s2517_s1 + $0x104] ss:$8 sps:$4 sm:$0xff]   ;;  %v1750_v31 = vld [vmem:[%s2517_s1 + $0x100] ss:$8 sps:$4 sm:$0xff]   ;;  %v1751_v32 = vld [vmem:[%s2517_s1 + $0xf4] ss:$8 sps:$4 sm:$0xff]  }
   0xc   :  { %791 = vmatpush1.bf16.msra.mxu1 %v1720_v11  ;;  %751 = vmatprep.subr.bf16.mxu0 %v1721_v12  ;;  %v1754_v33 = vld [vmem:[%s2517_s1 + $0x1f4] ss:$8 sps:$4 sm:$0xff]   ;;  %v1753_v34 = vld [vmem:[%s2517_s1 + $0xf0] ss:$8 sps:$4 sm:$0xff]   ;;  %v1757_v36 = vld [vmem:[%s2517_s1 + $0xe4] ss:$8 sps:$4 sm:$0xff]  }
   0xd   :  { %792 = vmatprep.subr.bf16.mxu1 %v1724_v13  ;;  %v1756_v35 = vld [vmem:[%s2517_s1 + $0x1f0] ss:$8 sps:$4 sm:$0xff]   ;;  %v1760_v37 = vld [vmem:[%s2517_s1 + $0x1e4] ss:$8 sps:$4 sm:$0xff]   ;;  %v1759_v41 = vld [vmem:[%s2517_s1 + $0xe0] ss:$8 sps:$4 sm:$0xff]  }
   0xe   :  { %v1762_v42 = vld [vmem:[%s2517_s1 + $0x1e0] ss:$8 sps:$4 sm:$0xff]   ;;  %v1763_v43 = vld [vmem:[%s2517_s1 + $0xd4] ss:$8 sps:$4 sm:$0xff]   ;;  %v2129_v46 = vshrl.u32 %v63_v40, 7  ;;  %vm1031_vm2 = vcmask 97280  }
   0xf   :  { %752 = vmatpush1.bf16.msra.mxu0 %v1723_v14  ;;  %v1766_v44 = vld [vmem:[%s2517_s1 + $0x1d4] ss:$8 sps:$4 sm:$0xff]   ;;  %v1765_v47 = vld [vmem:[%s2517_s1 + $0xd0] ss:$8 sps:$4 sm:$0xff]   ;;  %v1769_v49 = vld [vmem:[%s2517_s1 + $0xc4] ss:$8 sps:$4 sm:$0xff]  }
  0x10   :  { %793 = vmatpush1.bf16.msra.mxu1 %v1726_v15  ;;  %753 = vmatprep.subr.bf16.mxu0 %v1727_v16  ;;  %v1768_v48 = vld [vmem:[%s2517_s1 + $0x1d0] ss:$8 sps:$4 sm:$0xff]   ;;  %v1771_v50 = vld [vmem:[%s2517_s1 + $0xc0] ss:$8 sps:$4 sm:$0xff]   ;;  %v1772_v51 = vld [vmem:[%s2517_s1 + $0x1c4] ss:$8 sps:$4 sm:$0xff]   ;;  %v2147_v52 = vsub.s32 %v62_v45, %v2129_v46 }
  0x11   :  { %794 = vmatprep.subr.bf16.mxu1 %v1730_v17  ;;  %v1774_v53 = vld [vmem:[%s2517_s1 + $0x1c0] ss:$8 sps:$4 sm:$0xff]   ;;  %v1775_v56 = vld [vmem:[%s2517_s1 + $0xb4] ss:$8 sps:$4 sm:$0xff]   ;;  %v1777_v62 = vld [vmem:[%s2517_s1 + $0xb0] ss:$8 sps:$4 sm:$0xff]  }
  0x12   :  { %v1798_v54 = vld [vmem:[%s2516_s0] ss:$14 sps:$4 sm:$0xff]   ;;  %v1800_v55 = vld [vmem:[%s2516_s0 + $0x1c] ss:$14 sps:$4 sm:$0xff]   ;;  %v1806_v60 = vld [vmem:[%s2516_s0 + $0x4] ss:$14 sps:$4 sm:$0xff]  }
  0x13   :  { %754 = vmatpush1.bf16.msra.mxu0 %v1729_v18  ;;  %v1778_v57 = vld [vmem:[%s2517_s1 + $0x1b4] ss:$8 sps:$4 sm:$0xff]   ;;  %v66_v58 = vrot.slane %v1798_v54, %v2147_v52  ;;  %v80_v59 = vrot.slane %v1800_v55, %v2147_v52  ;;  %v1807_v61 = vld [vmem:[%s2516_s0 + $0x20] ss:$14 sps:$4 sm:$0xff]   ;;  %v73_v0 = vrot.slane %v1806_v60, %v2147_v52  ;;  %vm1166_vm3 = vcmask 1040384  }
  0x14   :  { %795 = vmatpush1.bf16.msra.mxu1 %v1732_v19  ;;  %755 = vmatprep.subr.bf16.mxu0 %v1733_v20  ;;  %v87_v1 = vrot.slane %v1807_v61, %v2147_v52  ;;  %v1780_v2 = vld [vmem:[%s2517_s1 + $0x1b0] ss:$8 sps:$4 sm:$0xff]   ;;  %v1781_v3 = vld [vmem:[%s2517_s1 + $0xa4] ss:$8 sps:$4 sm:$0xff]   ;;  %v1783_v7 = vld [vmem:[%s2517_s1 + $0xa0] ss:$8 sps:$4 sm:$0xff]  }
  0x15   :  { %796 = vmatprep.subr.bf16.mxu1 %v1736_v21  ;;  %v89_v63 = vcombine.high %v66_v58, %v80_v59  ;;  %v1784_v4 = vld [vmem:[%s2517_s1 + $0x1a4] ss:$8 sps:$4 sm:$0xff]   ;;  %v1786_v9 = vld [vmem:[%s2517_s1 + $0x1a0] ss:$8 sps:$4 sm:$0xff]   ;;  %v1787_v10 = vld [vmem:[%s2517_s1 + $0x94] ss:$8 sps:$4 sm:$0xff]   ;;  %v88_v16 = vcombine.low %v66_v58, %v80_v59 }
  0x16   :  { %v91_v6 = vcombine.high %v73_v0, %v87_v1  ;;  %v1790_v11 = vld [vmem:[%s2517_s1 + $0x194] ss:$8 sps:$4 sm:$0xff]   ;;  %v1789_v12 = vld [vmem:[%s2517_s1 + $0x90] ss:$8 sps:$4 sm:$0xff]   ;;  %v1793_v14 = vld [vmem:[%s2517_s1 + $0x84] ss:$8 sps:$4 sm:$0xff]   ;;  %v90_v18 = vcombine.low %v73_v0, %v87_v1 }
  0x17   :  { %756 = vmatpush1.bf16.msra.mxu0 %v1735_v22  ;;  %v135_v5 = vpack.c.bf16 %v89_v63, %v89_v63  ;;  %v1792_v13 = vld [vmem:[%s2517_s1 + $0x190] ss:$8 sps:$4 sm:$0xff]   ;;  %v1796_v15 = vld [vmem:[%s2517_s1 + $0x184] ss:$8 sps:$4 sm:$0xff]   ;;  %v1795_v17 = vld [vmem:[%s2517_s1 + $0x80] ss:$8 sps:$4 sm:$0xff]   ;;  %v134_v21 = vpack.c.bf16 %v88_v16, %v88_v16 }
  0x18   :  { %797 = vmatpush1.bf16.msra.mxu1 %v1738_v23  ;;  %757 = vmatprep.subr.bf16.mxu0 %v1739_v24  ;;  %v137_v8 = vpack.c.bf16 %v91_v6, %v91_v6  ;;  %v1802_v19 = vld [vmem:[%s2517_s1 + $0x180] ss:$8 sps:$4 sm:$0xff]   ;;  %v1805_v20 = vld [vmem:[%s2517_s1 + $0x274] ss:$8 sps:$4 sm:$0xff]   ;;  %v1803_v22 = vld [vmem:[%s2517_s1 + $0x270] ss:$8 sps:$4 sm:$0xff]   ;;  %v136_v23 = vpack.c.bf16 %v90_v18, %v90_v18 }
  0x19   :  { %798 = vmatprep.subr.bf16.mxu1 %v1742_v25  ;;  %777 = vmatprep.mubr.bf16.mxu0 %v135_v5  ;;  %v1810_v24 = vld [vmem:[%s2517_s1 + $0x264] ss:$8 sps:$4 sm:$0xff]   ;;  %v1808_v25 = vld [vmem:[%s2517_s1 + $0x260] ss:$8 sps:$4 sm:$0xff]   ;;  %v1825_v40 = vld [vmem:[%s2517_s1 + $0x214] ss:$8 sps:$4 sm:$0xff]  }
  0x1a   :  { %818 = vmatprep.mubr.bf16.mxu1 %v137_v8  ;;  %v1822_v38 = vld [vmem:[%s2517_s1 + $0x224] ss:$8 sps:$4 sm:$0xff]   ;;  %v1820_v39 = vld [vmem:[%s2517_s1 + $0x220] ss:$8 sps:$4 sm:$0xff]   ;;  %v1829_v45 = vld [vmem:[%s2517_s1 + $0x2f0] ss:$8 sps:$4 sm:$0xff]  }
  0x1b   :  { %758 = vmatpush1.bf16.msra.mxu0 %v1741_v26  ;;  %v1853_v26 = vld [vmem:[%s2516_s0 + $0x8] ss:$14 sps:$4 sm:$0xff]   ;;  %v1852_v60 = vld [vmem:[%s2517_s1 + $0x284] ss:$8 sps:$4 sm:$0xff]   ;;  %vm1283_vm4 = vcmask 1043456   ;;  %vm1162_vm5 = vcmask 15360  }
  0x1c   :  { %799 = vmatpush1.bf16.msra.mxu1 %v1744_v27  ;;  %759 = vmatprep.subr.bf16.mxu0 %v1745_v28  ;;  %v1856_v27 = vld [vmem:[%s2516_s0 + $0x24] ss:$14 sps:$4 sm:$0xff]   ;;  %v1855_v61 = vld [vmem:[%s2516_s0 + $0xc] ss:$14 sps:$4 sm:$0x33]   ;;  %vm1938_vm6 = vmmov 0  }
  0x1d   :  { %800 = vmatprep.subr.bf16.mxu1 %v1748_v29  ;;  %v1813_v28 = vld [vmem:[%s2517_s1 + $0x254] ss:$8 sps:$4 sm:$0xff]   ;;  %v102_v29 = vrot.slane %v1853_v26, %v2147_v52  ;;  %v1841_v55 = vld [vmem:[%s2517_s1 + $0x2b0] ss:$8 sps:$4 sm:$0xff]   ;;  %v1850_v0 = vld [vmem:[%s2517_s1 + $0x280] ss:$8 sps:$4 sm:$0xff]  }
  0x1e   :  { %v1843_v54 = vld [vmem:[%s2517_s1 + $0x2b4] ss:$8 sps:$4 sm:$0xff]   ;;  %v1847_v59 = vld [vmem:[%s2517_s1 + $0x290] ss:$8 sps:$4 sm:$0xff]   ;;  %v1861_v1 = vld [vmem:[%s2517_s1 + $0x304] ss:$8 sps:$4 sm:$0xff]  }
  0x1f   :  { %760 = vmatpush1.bf16.msra.mxu0 %v1747_v30  ;;  %v116_v30 = vrot.slane %v1856_v27, %v2147_v52  ;;  %v1849_v58 = vld [vmem:[%s2517_s1 + $0x294] ss:$8 sps:$4 sm:$0xff]   ;;  %v1859_v5 = vld [vmem:[%s2517_s1 + $0x300] ss:$8 sps:$4 sm:$0xff]   ;;  %v1879_v18 = vld [vmem:[%s2519_s3 + $0x24] ss:$8 sps:$4 sm:$0xff]  }
  0x20   :  { %801 = vmatpush1.bf16.msra.mxu1 %v1750_v31  ;;  %761 = vmatprep.subr.bf16.mxu0 %v1751_v32  ;;  %v1811_v31 = vld [vmem:[%s2517_s1 + $0x250] ss:$8 sps:$4 sm:$0xff]   ;;  %v1816_v32 = vld [vmem:[%s2517_s1 + $0x244] ss:$8 sps:$4 sm:$0xff]   ;;  %v1876_v16 = vld [vmem:[%s2519_s3 + $0x34] ss:$8 sps:$4 sm:$0xff]  }
  0x21   :  { %802 = vmatprep.subr.bf16.mxu1 %v1754_v33  ;;  %v125_v33 = vcombine.high %v102_v29, %v116_v30  ;;  %v124_v63 = vcombine.low %v102_v29, %v116_v30  ;;  %v243_v27 = vsub.s32 0, %v2129_v46  ;;  %v247_v29 = vsub.s32 1, %v2129_v46 }
  0x22   :  { %vm1395_vm7 = vcmask 1046528   ;;  %vm1279_vm8 = vcmask 982016   ;;  %vm1391_vm9 = vcmask 900096  }
  0x23   :  { %762 = vmatpush2.bf16.msra.mxu0 %v1753_v34  ;;  %v1814_v34 = vld [vmem:[%s2517_s1 + $0x240] ss:$8 sps:$4 sm:$0xff]  }
  0x24   :  { %803 = vmatpush2.bf16.msra.mxu1 %v1756_v35  ;;  %763 = vmatprep.subr.bf16.mxu0 %v1757_v36  ;;  %v139_v35 = vpack.c.bf16 %v125_v33, %v125_v33  ;;  %v1819_v36 = vld [vmem:[%s2517_s1 + $0x234] ss:$8 sps:$4 sm:$0xff]  }
  0x25   :  { %804 = vmatprep.subr.bf16.mxu1 %v1760_v37  ;;  %v1817_v37 = vld [vmem:[%s2517_s1 + $0x230] ss:$8 sps:$4 sm:$0xff]  }
  0x27   :  { %764 = vmatpush2.bf16.msra.mxu0 %v1759_v41  ;;  %v1823_v41 = vld [vmem:[%s2517_s1 + $0x210] ss:$8 sps:$4 sm:$0xff]  }
  0x28   :  { %805 = vmatpush2.bf16.msra.mxu1 %v1762_v42  ;;  %765 = vmatprep.subr.bf16.mxu0 %v1763_v43  ;;  %v1828_v42 = vld [vmem:[%s2517_s1 + $0x204] ss:$8 sps:$4 sm:$0xff]   ;;  %v1826_v43 = vld [vmem:[%s2517_s1 + $0x200] ss:$8 sps:$4 sm:$0xff]  }
  0x29   :  { %806 = vmatprep.subr.bf16.mxu1 %v1766_v44  ;;  %v1831_v44 = vld [vmem:[%s2517_s1 + $0x2f4] ss:$8 sps:$4 sm:$0xff]  }
  0x2b   :  { %766 = vmatpush2.bf16.msra.mxu0 %v1765_v47  ;;  %v1834_v47 = vld [vmem:[%s2517_s1 + $0x2e4] ss:$8 sps:$4 sm:$0xff]  }
  0x2c   :  { %807 = vmatpush2.bf16.msra.mxu1 %v1768_v48  ;;  %767 = vmatprep.subr.bf16.mxu0 %v1769_v49  ;;  %v1832_v48 = vld [vmem:[%s2517_s1 + $0x2e0] ss:$8 sps:$4 sm:$0xff]   ;;  %v1837_v49 = vld [vmem:[%s2517_s1 + $0x2d4] ss:$8 sps:$4 sm:$0xff]  }
  0x2d   :  { %808 = vmatprep.subr.bf16.mxu1 %v1772_v51  ;;  %v1840_v51 = vld [vmem:[%s2517_s1 + $0x2c4] ss:$8 sps:$4 sm:$0xff]  }
  0x2f   :  { %768 = vmatpush2.bf16.msra.mxu0 %v1771_v50  ;;  %v1835_v50 = vld [vmem:[%s2517_s1 + $0x2d0] ss:$8 sps:$4 sm:$0xff]  }
  0x30   :  { %809 = vmatpush2.bf16.msra.mxu1 %v1774_v53  ;;  %769 = vmatprep.subr.bf16.mxu0 %v1775_v56  ;;  %v1838_v53 = vld [vmem:[%s2517_s1 + $0x2c0] ss:$8 sps:$4 sm:$0xff]   ;;  %v1846_v56 = vld [vmem:[%s2517_s1 + $0x2a4] ss:$8 sps:$4 sm:$0xff]  }
  0x31   :  { %810 = vmatprep.subr.bf16.mxu1 %v1778_v57  ;;  %v1844_v57 = vld [vmem:[%s2517_s1 + $0x2a0] ss:$8 sps:$4 sm:$0xff]  }
  0x33   :  { %770 = vmatpush2.bf16.msra.mxu0 %v1777_v62  ;;  %v1858_v62 = vld [vmem:[%s2516_s0 + $0x28] ss:$14 sps:$4 sm:$0x33]  }
  0x34   :  { %811 = vmatpush2.bf16.msra.mxu1 %v1780_v2  ;;  %771 = vmatprep.subr.bf16.mxu0 %v1781_v3  ;;  %v109_v2 = vrot.slane %v1855_v61, %v2147_v52  ;;  %v123_v3 = vrot.slane %v1858_v62, %v2147_v52  ;;  %v1864_v52 = vld [vmem:[%s2519_s3 + $0x74] ss:$8 sps:$4 sm:$0xff]  }
  0x35   :  { %812 = vmatprep.subr.bf16.mxu1 %v1784_v4  ;;  %v138_v4 = vpack.c.bf16 %v124_v63, %v124_v63  ;;  %v1889_v61 = vld [vmem:[%s2521_s5 + $0x38] sm:$0xff]   ;;  %v1890_v63 = vld [vmem:[%s2521_s5 + $0x30] sm:$0xff]  }
  0x36   :  { %v126_v6 = vcombine.low %v109_v2, %v123_v3  ;;  %v1893_v2 = vld [vmem:[%s2521_s5 + $0x18] sm:$0xff]   ;;  %v1894_v3 = vld [vmem:[%s2521_s5 + $0x10] sm:$0xff]  }
  0x37   :  { %772 = vmatpush2.bf16.msra.mxu0 %v1783_v7  ;;  %v1936_v7 = vmov 0  }
  0x38   :  { %813 = vmatpush2.bf16.msra.mxu1 %v1786_v9  ;;  %773 = vmatprep.subr.bf16.mxu0 %v1787_v10  ;;  %v140_v8 = vpack.c.bf16 %v126_v6, %v126_v6  ;;  %v1862_v9 = vld [vmem:[%s2519_s3 + $0x70] ss:$8 sps:$4 sm:$0xff]   ;;  %v1867_v10 = vld [vmem:[%s2519_s3 + $0x64] ss:$8 sps:$4 sm:$0xff]  }
  0x39   :  { %814 = vmatprep.subr.bf16.mxu1 %v1790_v11  ;;  %v1865_v11 = vld [vmem:[%s2519_s3 + $0x60] ss:$8 sps:$4 sm:$0xff]  }
  0x3a   :  { %v1897_v6 = vld [vmem:[%s2521_s5 + $0x40] ss:$0 sps:$4 sm:$0x11]  }
  0x3b   :  { %774 = vmatpush2.bf16.msra.mxu0 %v1789_v12  ;;  %v1870_v12 = vld [vmem:[%s2519_s3 + $0x54] ss:$8 sps:$4 sm:$0xff]  }
  0x3c   :  { %815 = vmatpush2.bf16.msra.mxu1 %v1792_v13  ;;  %775 = vmatprep.subr.bf16.mxu0 %v1793_v14  ;;  %v1868_v13 = vld [vmem:[%s2519_s3 + $0x50] ss:$8 sps:$4 sm:$0xff]   ;;  %v1873_v14 = vld [vmem:[%s2519_s3 + $0x44] ss:$8 sps:$4 sm:$0xff]  }
  0x3d   :  { %816 = vmatprep.subr.bf16.mxu1 %v1796_v15  ;;  %v1871_v15 = vld [vmem:[%s2519_s3 + $0x40] ss:$8 sps:$4 sm:$0xff]  }
  0x3f   :  { %776 = vmatpush2.bf16.msra.mxu0 %v1795_v17  ;;  %v1874_v17 = vld [vmem:[%s2519_s3 + $0x30] ss:$8 sps:$4 sm:$0xff]  }
  0x40   :  { %817 = vmatpush2.bf16.msra.mxu1 %v1802_v19  ;;  %827 = vmatprep.subr.bf16.mxu0 %v1805_v20  ;;  %v1877_v19 = vld [vmem:[%s2519_s3 + $0x20] ss:$8 sps:$4 sm:$0xff]   ;;  %v1882_v20 = vld [vmem:[%s2519_s3 + $0x14] ss:$8 sps:$4 sm:$0xff]  }
  0x41   :  { %1042 = vmatprep.subr.bf16.mxu1 %v1864_v52  ;;  %v1937_v52 = vmov 0.0  }
  0x42   :  { %778 = vmatmul.mubr.bf16.vlgmr.msra.gmra.mxu0 %v134_v21  ;;  %v1880_v21 = vld [vmem:[%s2519_s3 + $0x10] ss:$8 sps:$4 sm:$0xff]  }
  0x43   :  { %828 = vmatpush1.bf16.msra.mxu0 %v1803_v22  ;;  %819 = vmatmul.mubr.bf16.vlgmr.msra.gmra.mxu1 %v136_v23  ;;  %v1885_v22 = vld [vmem:[%s2519_s3 + $0x4] ss:$8 sps:$4 sm:$0xff]   ;;  %v1883_v23 = vld [vmem:[%s2519_s3] ss:$8 sps:$4 sm:$0xff]  }
  0x44   :  { %829 = vmatprep.subr.bf16.mxu0 %v1810_v24  ;;  %859 = vmatprep.mubr.bf16.mxu0 %v139_v35  ;;  %v1886_v24 = vld [vmem:[%s2519_s3 + $0x84] ss:$8 sps:$4 sm:$0x3f]  }
  0x45   :  { %1043 = vmatpush1.bf16.msra.mxu1 %v1862_v9  ;;  %v1898_v9 = vld [vmem:[%s2523_s7 + $0x38] ss:$0 sps:$4 sm:$0xff]  }
  0x46   :  { %1044 = vmatprep.subr.bf16.mxu1 %v1867_v10  ;;  %v1285_v10 = vsel %vm1283_vm4, %v1898_v9, 0 }
  0x47   :  { %830 = vmatpush1.bf16.msra.mxu0 %v1808_v25  ;;  %v1888_v25 = vld [vmem:[%s2519_s3 + $0x80] ss:$8 sps:$4 sm:$0x3f]  }
  0x48   :  { %831 = vmatprep.subr.bf16.mxu0 %v1813_v28  ;;  %v1037_v26 = vsel %vm1035_vm1, %v1888_v25, 0  ;;  %v239_v28 = vld [vmem:[%s2518_s2] sm:$0x3] }
  0x49   :  { %1045 = vmatpush1.bf16.msra.mxu1 %v1865_v11  ;;  %v244_v30 = vrot.slane %v239_v28, %v243_v27  ;;  %v1900_v11 = vld [vmem:[%s2523_s7 + $0x28] sm:$0xff]  }
  0x4a   :  { %1046 = vmatprep.subr.bf16.mxu1 %v1870_v12  ;;  %v1901_v12 = vld [vmem:[%s2523_s7 + $0x20] sm:$0xff]  }
  0x4b   :  { %832 = vmatpush1.bf16.msra.mxu0 %v1811_v31  ;;  %v248_v31 = vrot.slane %v239_v28, %v247_v29 }
  0x4c   :  { %833 = vmatprep.subr.bf16.mxu0 %v1816_v32 }
  0x4d   :  { %1047 = vmatpush1.bf16.msra.mxu1 %v1868_v13  ;;  %v1902_v13 = vld [vmem:[%s2523_s7 + $0x18] sm:$0xff]  }
  0x4e   :  { %1048 = vmatprep.subr.bf16.mxu1 %v1873_v14  ;;  %v1903_v14 = vld [vmem:[%s2523_s7 + $0x10] sm:$0xff]  }
  0x4f   :  { %834 = vmatpush1.bf16.msra.mxu0 %v1814_v34 }
  0x50   :  { %835 = vmatprep.subr.bf16.mxu0 %v1819_v36 }
  0x51   :  { %1049 = vmatpush1.bf16.msra.mxu1 %v1871_v15  ;;  %v931_v15 = vld [vmem:[%s2520_s4] sm:$0x3] }
  0x52   :  { %1050 = vmatprep.subr.bf16.mxu1 %v1876_v16  ;;  %v936_v16 = vrot.slane %v931_v15, %v243_v27  ;;  %v1904_v27 = vld [vmem:[%s2523_s7 + $0x8] sm:$0xff]  }
  0x53   :  { %836 = vmatpush1.bf16.msra.mxu0 %v1817_v37 }
  0x54   :  { %837 = vmatprep.subr.bf16.mxu0 %v1822_v38 }
  0x55   :  { %1051 = vmatpush1.bf16.msra.mxu1 %v1874_v17  ;;  %v940_v17 = vrot.slane %v931_v15, %v247_v29  ;;  %v1905_v29 = vld [vmem:[%s2523_s7] sm:$0xff]  }
  0x56   :  { %1052 = vmatprep.subr.bf16.mxu1 %v1879_v18 }
  0x57   :  { %838 = vmatpush1.bf16.msra.mxu0 %v1820_v39 }
  0x58   :  { %839 = vmatprep.subr.bf16.mxu0 %v1825_v40 }
  0x59   :  { %1053 = vmatpush1.bf16.msra.mxu1 %v1877_v19 }
  0x5a   :  { %1054 = vmatprep.subr.bf16.mxu1 %v1882_v20 }
  0x5b   :  { %840 = vmatpush1.bf16.msra.mxu0 %v1823_v41 }
  0x5c   :  { %841 = vmatprep.subr.bf16.mxu0 %v1828_v42 }
  0x5d   :  { %1055 = vmatpush1.bf16.msra.mxu1 %v1880_v21 }
  0x5e   :  { %1056 = vmatprep.subr.bf16.mxu1 %v1885_v22 }
  0x5f   :  { %842 = vmatpush1.bf16.msra.mxu0 %v1826_v43 }
  0x60   :  { %843 = vmatprep.subr.bf16.mxu0 %v1831_v44 }
  0x61   :  { %1057 = vmatpush1.bf16.msra.mxu1 %v1883_v23 }
  0x62   :  { %1606 = vmatprep.subr.msk.bf16.mxu1 %vm1035_vm1, %v1886_v24 }
  0x63   :  { %844 = vmatpush2.bf16.msra.mxu0 %v1829_v45 }
  0x64   :  { %845 = vmatprep.subr.bf16.mxu0 %v1834_v47 }
  0x65   :  { %1073 = vmatpush2.bf16.msra.mxu1 %v1037_v26 }
  0x66   :  { %1170 = vmatprep.subr.bf16.mxu1 %v1936_v7 }
  0x67   :  { %846 = vmatpush2.bf16.msra.mxu0 %v1832_v48 }
  0x68   :  { %847 = vmatprep.subr.bf16.mxu0 %v1837_v49 }
  0x6b   :  { %848 = vmatpush2.bf16.msra.mxu0 %v1835_v50 }
  0x6c   :  { %849 = vmatprep.subr.bf16.mxu0 %v1840_v51 }
  0x6f   :  { %850 = vmatpush2.bf16.msra.mxu0 %v1838_v53 }
  0x70   :  { %851 = vmatprep.subr.bf16.mxu0 %v1843_v54 }
  0x73   :  { %852 = vmatpush2.bf16.msra.mxu0 %v1841_v55 }
  0x74   :  { %853 = vmatprep.subr.bf16.mxu0 %v1846_v56 }
  0x77   :  { %854 = vmatpush2.bf16.msra.mxu0 %v1844_v57 }
  0x78   :  { %855 = vmatprep.subr.bf16.mxu0 %v1849_v58 }
  0x7b   :  { %856 = vmatpush2.bf16.msra.mxu0 %v1847_v59 }
  0x7c   :  { %857 = vmatprep.subr.bf16.mxu0 %v1852_v60 }
  0x7f   :  { %858 = vmatpush2.bf16.msra.mxu0 %v1850_v0  ;;  %v1891_v0 = vld [vmem:[%s2521_s5 + $0x28] sm:$0xff]  }
  0x80   :  { %882 = vmatprep.subr.bf16.mxu0 %v1861_v1  ;;  %v1892_v1 = vld [vmem:[%s2521_s5 + $0x20] sm:$0xff]  }
  0x82   :  { %860 = vmatmul.mubr.bf16.vlgmr.msra.gmra.mxu0 %v138_v4  ;;  %v1895_v4 = vld [vmem:[%s2521_s5 + $0x8] sm:$0xff]  }
  0x83   :  { %883 = vmatpush1.bf16.msra.mxu0 %v1859_v5  ;;  %900 = vmatprep.mubr.bf16.mxu0 %v1936_v7  ;;  %v1896_v5 = vld [vmem:[%s2521_s5] sm:$0xff]  }
  0x84   :  { %1657 = vmatprep.subr.bf16.mxu0 %v1937_v52 }
  0x8a   :  { %1587 = vmatmul.mubr.msk.bf16.vlgmr.msra.gmra.mxu0 %vm741_vm0, %v140_v8  ;;  %v1168_v8 = vsel %vm1166_vm3, %v1897_v6, 0 }
  0x8b   :  { %1658 = vmatpush3.bf16.msra.mxu0 %v1285_v10  ;;  %1673 = vmatprep.mubr.msk.bf16.mxu0 %vm1938_vm6, %v1937_v52 }
  0x8c   :  { %1659 = vmatprep.subr.bf16.mxu0 %v1937_v52 }
 0x102   :  { %v779_v32 = vpop.f32.mrf.mxu0 }
 0x103   :  { %v780_v33 = vadd.f32 %v779_v32, %v244_v30  ;;  %v820_v34 = vpop.f32.mrf.mxu1  ;;  %v1906_v30 = vld [vmem:[%s2525_s9 + $0x30] sm:$0x7f]   ;;  %v1907_v32 = vld [vmem:[%s2525_s9 + $0x28] sm:$0xff]  }
 0x104   :  { %v781_v35 = vpop.f32.mrf.mxu0 }
 0x105   :  { %v782_v36 = vadd.f32 %v781_v35, %v248_v31  ;;  %v821_v37 = vadd.f32 %v820_v34, %v780_v33  ;;  %v822_v38 = vpop.f32.mrf.mxu1  ;;  %v1397_v31 = vsel %vm1395_vm7, %v1906_v30, 0  ;;  %v1908_v33 = vld [vmem:[%s2525_s9 + $0x20] sm:$0xff]   ;;  %v1909_v34 = vld [vmem:[%s2525_s9 + $0x18] sm:$0xff]   ;;  %v1910_v35 = vld [vmem:[%s2525_s9 + $0x10] sm:$0xff]  }
 0x106   :  { %v783_v39 = vpop.f32.mrf.mxu0 }
 0x107   :  { %v823_v40 = vadd.f32 %v822_v38, %v782_v36  ;;  %v824_v41 = vpop.f32.mrf.mxu1  ;;  %v1608_v36 = vld [vmem:[%s2522_s6] ss:$0 sm:$0xff] }
 0x108   :  { %v784_v42 = vpop.f32.mrf.mxu0 }
 0x109   :  { %v825_v43 = vpop.f32.mrf.mxu1 }
 0x142   :  { %v861_v44 = vpop.f32.mrf.mxu0 }
 0x143   :  { %v862_v49 = vadd.f32 %v861_v44, %v821_v37  ;;  %v1911_v44 = vld [vmem:[%s2525_s9 + $0x8] sm:$0xff]  }
 0x144   :  { %v863_v45 = vpop.f32.mrf.mxu0 }
 0x145   :  { %v864_v51 = vadd.f32 %v863_v45, %v823_v40  ;;  %v1912_v45 = vld [vmem:[%s2525_s9] sm:$0xff]  }
 0x146   :  { %v865_v47 = vpop.f32.mrf.mxu0 }
 0x147   :  { %v1619_v47 = vld [vmem:[%s2524_s8] ss:$0 sm:$0xff] }
 0x148   :  { %v866_v48 = vpop.f32.mrf.mxu0 }
 0x14a   :  { %v902_v50 = vpop.f32.mrf.mxu0 }
 0x14b   :  { %v903_v53 = vadd.f32 %v902_v50, %v862_v49 }
 0x14c   :  { %v904_v54 = vpop.f32.mrf.mxu0 }
 0x14d   :  { %v905_v55 = vadd.f32 %v904_v54, %v864_v51  ;;  %v909_v56 = vmax.f32 %v903_v53, 0.0 }
 0x14e   :  { %v906_v57 = vpop.f32.mrf.mxu0 }
 0x14f   :  { %v910_v58 = vmax.f32 %v905_v55, 0.0  ;;  %v911_v62 = vpack.c.bf16 %v909_v56, %v909_v56  ;;  %v1939_v56 = vmov 1966171168  }
 0x150   :  { %v907_v59 = vpop.f32.mrf.mxu0  ;;  %v1442_v57 = vunpack.c.l.s4 %v1939_v56 }
 0x151   :  { %v912_v60 = vpack.c.bf16 %v910_v58, %v910_v58  ;;  %v1629_v59 = vld [vmem:[%s2526_s10] ss:$0 sm:$0xff] }
 0x152   :  { %v1443_v58 = vunpack.c.0.s8 %v1442_v57 }
 0x153   :  { %1607 = vmatprep.mubr.msk.bf16.mxu1 %vm1031_vm2, %v912_v60 }
 0x154   :  { %1075 = vmatmul.mubr.bf16.vlgmr.msra.gmra.mxu1 %v911_v62  ;;  %v1446_v62 = vsub.s32 %v1443_v58, %v2129_v46 }
 0x155   :  { %1171 = vmatpush1.bf16.msra.mxu1 %v1889_v61 }
 0x156   :  { %1172 = vmatprep.subr.bf16.mxu1 %v1936_v7 }
 0x159   :  { %1173 = vmatpush1.bf16.msra.mxu1 %v1890_v63 }
 0x15a   :  { %1174 = vmatprep.subr.bf16.mxu1 %v1936_v7 }
 0x15d   :  { %1175 = vmatpush1.bf16.msra.mxu1 %v1891_v0 }
 0x15e   :  { %1176 = vmatprep.subr.bf16.mxu1 %v1936_v7 }
 0x161   :  { %1177 = vmatpush1.bf16.msra.mxu1 %v1892_v1 }
 0x162   :  { %1178 = vmatprep.subr.bf16.mxu1 %v1936_v7 }
 0x165   :  { %1179 = vmatpush1.bf16.msra.mxu1 %v1893_v2 }
 0x166   :  { %1180 = vmatprep.subr.bf16.mxu1 %v1936_v7 }
 0x169   :  { %1181 = vmatpush1.bf16.msra.mxu1 %v1894_v3 }
 0x16a   :  { %1182 = vmatprep.subr.bf16.mxu1 %v1936_v7 }
 0x16d   :  { %1183 = vmatpush1.bf16.msra.mxu1 %v1895_v4 }
 0x16e   :  { %1184 = vmatprep.subr.bf16.mxu1 %v1936_v7 }
 0x171   :  { %1185 = vmatpush1.bf16.msra.mxu1 %v1896_v5 }
 0x172   :  { %1200 = vmatprep.subr.bf16.mxu1 %v1936_v7  ;;  %v1899_v7 = vld [vmem:[%s2523_s7 + $0x30] sm:$0xff]  }
 0x173   :  { %1660 = vmatpush3.bf16.msra.mxu0 %v1899_v7 }
 0x174   :  { %1661 = vmatprep.subr.bf16.mxu0 %v1937_v52 }
 0x175   :  { %1201 = vmatpush2.bf16.msra.mxu1 %v1168_v8 }
 0x176   :  { %1677 = vmatprep.subr.bf16.mxu1 %v1937_v52 }
 0x177   :  { %1662 = vmatpush3.bf16.msra.mxu0 %v1900_v11 }
 0x178   :  { %1663 = vmatprep.subr.bf16.mxu0 %v1937_v52 }
 0x17b   :  { %1664 = vmatpush3.bf16.msra.mxu0 %v1901_v12 }
 0x17c   :  { %1665 = vmatprep.subr.bf16.mxu0 %v1937_v52 }
 0x17f   :  { %1666 = vmatpush3.bf16.msra.mxu0 %v1902_v13 }
 0x180   :  { %1667 = vmatprep.subr.bf16.mxu0 %v1937_v52 }
 0x183   :  { %1668 = vmatpush3.bf16.msra.mxu0 %v1903_v14 }
 0x184   :  { %1669 = vmatprep.subr.bf16.mxu0 %v1937_v52 }
 0x187   :  { %1670 = vmatpush3.bf16.msra.mxu0 %v1904_v27 }
 0x188   :  { %1671 = vmatprep.subr.bf16.mxu0 %v1937_v52 }
 0x18b   :  { %1672 = vmatpush3.bf16.msra.mxu0 %v1905_v29 }
 0x214   :  { %v1076_v18 = vpop.f32.mrf.mxu1 }
 0x215   :  { %v1077_v19 = vadd.f32 %v1076_v18, %v936_v16 }
 0x216   :  { %v1078_v20 = vpop.f32.mrf.mxu1 }
 0x217   :  { %v1079_v21 = vadd.f32 %v1078_v20, %v940_v17  ;;  %v1083_v22 = vmax.f32 %v1077_v19, 0.0 }
 0x218   :  { %v1080_v23 = vpop.f32.mrf.mxu1 }
 0x219   :  { %v1084_v24 = vmax.f32 %v1079_v21, 0.0  ;;  %v1085_v28 = vpack.c.bf16 %v1083_v22, %v1083_v22 }
 0x21a   :  { %v1081_v25 = vpop.f32.mrf.mxu1 }
 0x21b   :  { %v1086_v26 = vpack.c.bf16 %v1084_v24, %v1084_v24 }
 0x21d   :  { %1618 = vmatprep.mubr.msk.bf16.mxu1 %vm1162_vm5, %v1086_v26 }
 0x21e   :  { %1203 = vmatmul.mubr.bf16.vlgmr.msra.gmra.mxu1 %v1085_v28 }
 0x21f   :  { %1691 = vmatprep.mubr.msk.bf16.mxu1 %vm1938_vm6, %v1937_v52  ;;  %1678 = vmatpush3.bf16.msra.mxu1 %v1397_v31 }
 0x220   :  { %1679 = vmatprep.subr.bf16.mxu1 %v1937_v52 }
 0x223   :  { %1680 = vmatpush3.bf16.msra.mxu1 %v1907_v32 }
 0x224   :  { %1681 = vmatprep.subr.bf16.mxu1 %v1937_v52 }
 0x227   :  { %1682 = vmatpush3.bf16.msra.mxu1 %v1908_v33 }
 0x228   :  { %1683 = vmatprep.subr.bf16.mxu1 %v1937_v52 }
 0x22b   :  { %1684 = vmatpush3.bf16.msra.mxu1 %v1909_v34 }
 0x22c   :  { %1685 = vmatprep.subr.bf16.mxu1 %v1937_v52 }
 0x22f   :  { %1686 = vmatpush3.bf16.msra.mxu1 %v1910_v35 }
 0x230   :  { %1687 = vmatprep.subr.bf16.mxu1 %v1937_v52 }
 0x233   :  { %1688 = vmatpush3.bf16.msra.mxu1 %v1911_v44 }
 0x234   :  { %1689 = vmatprep.subr.bf16.mxu1 %v1937_v52 }
 0x237   :  { %1690 = vmatpush3.bf16.msra.mxu1 %v1912_v45 }
 0x2de   :  { %v1204_v37 = vpop.f32.mrf.mxu1 }
 0x2df   :  { %v1205_v38 = vadd.f32 %v1608_v36, %v1204_v37 }
 0x2e0   :  { %v1206_v39 = vpop.f32.mrf.mxu1 }
 0x2e1   :  { %v1210_v40 = vmax.f32 %v1205_v38, 0.0 }
 0x2e2   :  { %v1207_v41 = vpop.f32.mrf.mxu1 }
 0x2e3   :  { %v1211_v42 = vpack.c.bf16 %v1210_v40, %v1210_v40 }
 0x2e4   :  { %v1208_v43 = vpop.f32.mrf.mxu1 }
 0x2e5   :  { %1674 = vmatmul.mubr.msk.bf16.vlgmr.msra.gmra.mxu0 %vm1279_vm8, %v1211_v42 }
 0x3a5   :  { %v1321_v48 = vpop.f32.mrf.mxu0 }
 0x3a6   :  { %v1322_v49 = vadd.f32 %v1619_v47, %v1321_v48 }
 0x3a7   :  { %v1675_v50 = vpop.f32.mrf.mxu0 }
 0x3a8   :  { %v1327_v51 = vmax.f32 %v1322_v49, 0.0 }
 0x3a9   :  { %v1324_v53 = vpop.f32.mrf.mxu0 }
 0x3aa   :  { %v1328_v54 = vpack.c.bf16 %v1327_v51, %v1327_v51 }
 0x3ab   :  { %v1676_v55 = vpop.f32.mrf.mxu0 }
 0x3ac   :  { %1692 = vmatmul.mubr.msk.bf16.vlgmr.msra.gmra.mxu1 %vm1391_vm9, %v1328_v54 }
 0x46c   :  { %v1433_v60 = vpop.f32.mrf.mxu1 }
 0x46d   :  { %v1434_v61 = vadd.f32 %v1629_v59, %v1433_v60 }
 0x46e   :  { %v1693_v63 = vpop.f32.mrf.mxu1 }
 0x46f   :  { %v1439_v0 = vpack.c.bf16 %v1434_v61, %v1434_v61 }
 0x470   :  { %v1436_v1 = vpop.f32.mrf.mxu1 }
 0x471   :  { %v1447_v2 = vrot.slane %v1439_v0, %v1446_v62 }
 0x472   :  { %v1694_v3 = vpop.f32.mrf.mxu1 }
 0x473   :  { %v1448_v4 = vcombine.high %v1447_v2, %v1447_v2  ;;  %v1455_v5 = vrot.slane %v1447_v2, %v1446_v62  ;;  %1638 = vst.sshfl [vmem:[#allocation2] sm:$0x1 pattern:$0x73625140] %v1447_v2 }
 0x475   :  { %v1462_v6 = vrot.slane %v1448_v4, %v1446_v62  ;;  %v1463_v8 = vcombine.high %v1455_v5, %v1455_v5  ;;  %1639 = vst.sshfl [vmem:[#allocation2 + $0x1] sm:$0x1 pattern:$0x73625140] %v1448_v4 }
 0x477   :  { %v1464_v9 = vcombine.high %v1462_v6, %v1462_v6  ;;  %1471 = vst [vmem:[#allocation2 + $0x2] sm:$0x1] %v1463_v8 }
 0x479   :  { %1472 = vst [vmem:[#allocation2 + $0x3] sm:$0x1] %v1464_v9 }
 0x47a   :  { %1477 = vsyncadd [#allocation3], 48  ;;  %s1940_s8 = smov [#allocation2]  }
 0x47b   :  { %s1478_s9 = sshll.u32 %s1940_s8, 4  ;;  %s1479_s9 = int_to_ptr.vmem [resolvable:$true] %s1478_s9 }
 0x47c   :  { %s1913_s10 = scalar_lea.vmem %s1479_s9, 16  ;;  %s1917_s19 = scalar_lea.vmem %s1479_s9, 64 }
 0x47d   :  { %p1914_p0 = scmp.ne.s32.totalorder %s1479_s9, %s1913_s10  ;;  %p1918_p1 = scmp.lt.s32.totalorder %s1479_s9, %s1479_s9 }
 0x47e   :  { %p1919_p2 = scmp.lt.s32.totalorder %s1917_s19, %s1913_s10 }
 0x480   :  { %p1920_p3 = por %p1919_p2, %p1918_p1 }
 0x482   :  { %p1921_p4 = pnand %p1920_p3, %p1914_p0 }
 0x484   :  { %1924 = shalt.err (!%p1921_p4)
}
 0x485   :  { %s1941_s0 = smov 16   ;;  %s1942_s20 = smov 1  }
 0x486   :  { %1484 = dma.vmem_to_hbm [thread:$0]  %s1479_s9, 16, %s2527_s11, [#allocation3], %s1941_s0, %s1941_s0, %s1942_s20  }
 0x487   :  { %1933 = dma.done.wait [#allocation3], 64  }
 0x488   :  { %1934 = vsyncadd [#allocation3], 4294967232 }
 0x489   :  { %1488 = vsyncpa [#allocation3], 1 }

</bundles_post_ra>
